<compile_context>
chip_gen: v7x
topology: tpu7x:2x2x1
jax: 0.10.0
libtpu: 0.0.40
codegen_flags: <defaults>
</compile_context>

<pallas_src>
import functools
import math

import jax
import jax.numpy as jnp
from jax.experimental import pallas as pl
from jax.experimental.pallas import tpu as pltpu


# ---------------------------------------------------------------------------
# Fused kernel: one grid step == `bt` full batch rows.
#   x:    (bt*S, H)   bf16, rows grouped per batch row
#   wqkv: (H, 3H)     bf16 block-diagonal fused QKV weight (scale folded into Q)
#   bqkv: (1, 3H)     f32
#   wo:   (H, H)      bf16 heads_proj weight, (in, out) layout
#   bo:   (1, H)      f32
#   out:  (bt*S, H)   f32, final projected output (concat layout)
# ---------------------------------------------------------------------------
def _fused_mha_kernel(x_ref, wqkv_ref, bqkv_ref, wo_ref, bo_ref, o_ref, *,
                      n_heads, seq_len):
    S = seq_len
    R, H = x_ref.shape
    D = H // n_heads
    nb = R // S                                   # batch rows in this block

    # Fused block-diagonal QKV projection: ONE (R, H) @ (H, 3H) MXU matmul.
    # The 1/sqrt(D) scale is already folded into the Q columns of wqkv / bqkv.
    qkv = jnp.dot(x_ref[...], wqkv_ref[...],
                  preferred_element_type=jnp.float32) + bqkv_ref[...]
    # column layout: [0, H) = Q (heads concat), [H, 2H) = K, [2H, 3H) = V

    head_rows = []
    for b in range(nb):                            # static unroll (nb is tiny)
        qkv_b = qkv[b * S:(b + 1) * S, :]          # (S, 3H)
        row_heads = []
        for h in range(n_heads):                   # static unroll
            c0 = h * D
            q = qkv_b[:, c0:c0 + D].astype(jnp.bfloat16)              # (S, D), pre-scaled
            k = qkv_b[:, H + c0:H + c0 + D].astype(jnp.bfloat16)
            v = qkv_b[:, 2 * H + c0:2 * H + c0 + D].astype(jnp.bfloat16)

            scores = jnp.dot(q, k.T, preferred_element_type=jnp.float32)   # (S, S) f32

            # Softmax over keys in f32; reciprocal goes to the EUP slot.
            m = jnp.max(scores, axis=-1, keepdims=True)
            p = jnp.exp(scores - m)
            denom = jnp.sum(p, axis=-1, keepdims=True)
            attn = p * pl.reciprocal(denom, approx=True)

            row_heads.append(jnp.dot(attn.astype(jnp.bfloat16), v,
                                     preferred_element_type=jnp.float32))  # (S, D)
        # concat heads on the lane axis -> (S, H) in the PyTorch concat layout
        head_rows.append(jnp.concatenate(row_heads, axis=-1))

    concat = jnp.concatenate(head_rows, axis=0)    # (R, H)

    # Single output projection (K = H = n_heads*D): head reduction happens in the MXU.
    out = jnp.dot(concat.astype(jnp.bfloat16), wo_ref[...],
                  preferred_element_type=jnp.float32) + bo_ref[...]
    o_ref[...] = out.astype(o_ref.dtype)


def prepare_params(params, n_heads):
    """One-time parameter prep: PyTorch (out,in) -> (in,out), fused block-diag QKV,
    softmax scale folded into Q, matmul weights pre-cast to bf16."""
    H = params["wo"].shape[0]
    D = H // n_heads
    inv_scale = 1.0 / math.sqrt(D)

    def block_diag(w_stack, scale=1.0):
        # w_stack: (n_heads, D, D) in PyTorch (out, in) layout -> (H, H) block-diag of w.T
        bd = jnp.zeros((H, H), jnp.float32)
        for h in range(n_heads):
            bd = bd.at[h * D:(h + 1) * D, h * D:(h + 1) * D].set(w_stack[h].T * scale)
        return bd

    wq_bd = block_diag(params["wq"], inv_scale)
    wk_bd = block_diag(params["wk"])
    wv_bd = block_diag(params["wv"])
    wqkv = jnp.concatenate([wq_bd, wk_bd, wv_bd], axis=1).astype(jnp.bfloat16)  # (H, 3H)

    bqkv = jnp.concatenate([params["bq"].reshape(-1) * inv_scale,
                            params["bk"].reshape(-1),
                            params["bv"].reshape(-1)]).reshape(1, 3 * H)

    return {
        "wqkv": wqkv,                                        # (H, 3H) bf16
        "bqkv": bqkv.astype(jnp.float32),                    # (1, 3H) f32
        "woT": params["wo"].T.astype(jnp.bfloat16),          # (H, H)  bf16, (in, out)
        "bo": params["bo"].reshape(1, H).astype(jnp.float32),
    }


def be_multi_head_attention(X, prepped, n_heads, *, batch_tile=None):
    """X: (B, S, H) float32.  prepped: output of prepare_params."""
    B, S, H = X.shape
    bt = B if batch_tile is None else min(batch_tile, B)
    assert B % bt == 0
    R = bt * S                                   # rows per grid step

    # (B, S, H) -> (B*S, H), pre-cast to bf16 (halves x DMA; matmul inputs are bf16).
    x2d = X.reshape(B * S, H).astype(jnp.bfloat16)

    # Constant index_maps -> weights DMA'd once and stay VMEM-resident.
    x_spec = pl.BlockSpec((R, H), lambda i: (i, 0))
    wqkv_spec = pl.BlockSpec((H, 3 * H), lambda i: (0, 0))
    bqkv_spec = pl.BlockSpec((1, 3 * H), lambda i: (0, 0))
    wo_spec = pl.BlockSpec((H, H), lambda i: (0, 0))
    bo_spec = pl.BlockSpec((1, H), lambda i: (0, 0))
    o_spec = pl.BlockSpec((R, H), lambda i: (i, 0))

    out2d = pl.pallas_call(
        functools.partial(_fused_mha_kernel, n_heads=n_heads, seq_len=S),
        out_shape=jax.ShapeDtypeStruct((B * S, H), X.dtype),
        grid_spec=pltpu.PrefetchScalarGridSpec(
            num_scalar_prefetch=0,
            grid=(B // bt,),                      # collapses to (1,) at toy shapes
            in_specs=[x_spec, wqkv_spec, bqkv_spec, wo_spec, bo_spec],
            out_specs=o_spec,
        ),
        compiler_params=pltpu.CompilerParams(
            dimension_semantics=("parallel",)),
    )(x2d, prepped["wqkv"], prepped["bqkv"], prepped["woT"], prepped["bo"])
    return out2d.reshape(B, S, H)


def _reference(X, params, n_heads):
    """Pure-JAX f32 mirror of the PyTorch forward, for correctness checking."""
    B, S, H = X.shape
    D = H // n_heads
    scale = math.sqrt(D)
    outs = []
    for h in range(n_heads):
        xh = X[:, :, h * D:(h + 1) * D]
        q = xh @ params["wq"][h].T + params["bq"][h]
        k = xh @ params["wk"][h].T + params["bk"][h]
        v = xh @ params["wv"][h].T + params["bv"][h]
        scores = jnp.einsum("bsd,btd->bst", q, k) / scale
        w = jax.nn.softmax(scores, axis=-1)
        outs.append(jnp.einsum("bst,btd->bsd", w, v))
    concat = jnp.concatenate(outs, axis=-1)
    return concat @ params["wo"].T + params["bo"]


def _init_params(key, n_heads, hidden_dim):
    D = hidden_dim // n_heads
    keys = jax.random.split(key, 8)
    scale_h = 1.0 / math.sqrt(D)
    scale_o = 1.0 / math.sqrt(hidden_dim)
    return {
        # per-head Linear weights, PyTorch (out, in) layout, stacked over heads
        "wq": jax.random.uniform(keys[0], (n_heads, D, D), jnp.float32, -scale_h, scale_h),
        "bq": jax.random.uniform(keys[1], (n_heads, D), jnp.float32, -scale_h, scale_h),
        "wk": jax.random.uniform(keys[2], (n_heads, D, D), jnp.float32, -scale_h, scale_h),
        "bk": jax.random.uniform(keys[3], (n_heads, D), jnp.float32, -scale_h, scale_h),
        "wv": jax.random.uniform(keys[4], (n_heads, D, D), jnp.float32, -scale_h, scale_h),
        "bv": jax.random.uniform(keys[5], (n_heads, D), jnp.float32, -scale_h, scale_h),
        # heads_proj Linear (out, in)
        "wo": jax.random.uniform(keys[6], (hidden_dim, hidden_dim), jnp.float32, -scale_o, scale_o),
        "bo": jax.random.uniform(keys[7], (hidden_dim,), jnp.float32, -scale_o, scale_o),
    }


if __name__ == "__main__":
    B, S, H, n_heads = 2, 8, 32, 4   # head_dim = 8

    key = jax.random.PRNGKey(0)
    k_x, k_p = jax.random.split(key)
    X = jax.random.normal(k_x, (B, S, H), dtype=jnp.float32)
    params = _init_params(k_p, n_heads, H)
    prepped = prepare_params(params, n_heads)

    out = be_multi_head_attention(X, prepped, n_heads)
    out = jax.block_until_ready(out)

    ref = _reference(X, params, n_heads)
    assert out.shape == (B, S, H)
    # Tolerance accounts for bf16 MXU inputs (f32 accumulation) + approx reciprocal.
    assert jnp.allclose(out, ref, atol=5e-2, rtol=5e-2), (
        f"max abs diff {jnp.max(jnp.abs(out - ref))}")

    print("KERNEL_OK")
</pallas_src>

<mosaic_0001>
module attributes {stable_mosaic.version = 11 : i64} {
  func.func @_fused_mha_kernel(%arg0: i32, %arg1: memref<16x32xbf16, #tpu.memory_space<vmem>>, %arg2: memref<32x96xbf16, #tpu.memory_space<vmem>>, %arg3: memref<1x96xf32, #tpu.memory_space<vmem>>, %arg4: memref<32x32xbf16, #tpu.memory_space<vmem>>, %arg5: memref<1x32xf32, #tpu.memory_space<vmem>>, %arg6: memref<16x32xf32, #tpu.memory_space<vmem>>) attributes {dimension_semantics = [#tpu.dimension_semantics<parallel>], iteration_bounds = array<i64: 1>, scalar_prefetch = 0 : i64, scratch_operands = 0 : i64, tpu.core_type = #tpu.core_type<tc>, window_params = [{transform_indices = @transform_0, window_bounds = array<i64: 16, 32>}, {pipeline_mode = #tpu.pipeline_mode<synchronous>, transform_indices = @transform_1, window_bounds = array<i64: 32, 96>}, {pipeline_mode = #tpu.pipeline_mode<synchronous>, transform_indices = @transform_2, window_bounds = array<i64: 1, 96>}, {pipeline_mode = #tpu.pipeline_mode<synchronous>, transform_indices = @transform_3, window_bounds = array<i64: 32, 32>}, {pipeline_mode = #tpu.pipeline_mode<synchronous>, transform_indices = @transform_4, window_bounds = array<i64: 1, 32>}, {transform_indices = @transform_5, window_bounds = array<i64: 16, 32>}]} {
    %c0 = arith.constant 0 : index
    %c0_0 = arith.constant 0 : index
    %0 = vector.load %arg1[%c0, %c0_0] : memref<16x32xbf16, #tpu.memory_space<vmem>>, vector<16x32xbf16>
    %c0_1 = arith.constant 0 : index
    %c0_2 = arith.constant 0 : index
    %1 = vector.load %arg2[%c0_1, %c0_2] : memref<32x96xbf16, #tpu.memory_space<vmem>>, vector<32x96xbf16>
    %cst = arith.constant dense<0.000000e+00> : vector<16x96xf32>
    %2 = tpu.matmul %0, %1, %cst {dimension_numbers = #tpu.dot_dimension_numbers<[1], [0], [0], [1], [0, 0, 1, 1], [], []>} : vector<16x32xbf16>, vector<32x96xbf16>, vector<16x96xf32> -> vector<16x96xf32>
    %c0_3 = arith.constant 0 : index
    %c0_4 = arith.constant 0 : index
    %3 = vector.load %arg3[%c0_3, %c0_4] : memref<1x96xf32, #tpu.memory_space<vmem>>, vector<1x96xf32>
    %4 = vector.broadcast %3 : vector<1x96xf32> to vector<16x96xf32>
    %5 = arith.addf %2, %4 : vector<16x96xf32>
    %6 = vector.extract_strided_slice %5 {offsets = [0, 0], sizes = [8, 96], strides = [1, 1]} : vector<16x96xf32> to vector<8x96xf32>
    %7 = vector.extract_strided_slice %6 {offsets = [0, 0], sizes = [8, 8], strides = [1, 1]} : vector<8x96xf32> to vector<8x8xf32>
    %8 = arith.truncf %7 : vector<8x8xf32> to vector<8x8xbf16>
    %9 = vector.extract_strided_slice %6 {offsets = [0, 32], sizes = [8, 8], strides = [1, 1]} : vector<8x96xf32> to vector<8x8xf32>
    %10 = arith.truncf %9 : vector<8x8xf32> to vector<8x8xbf16>
    %11 = vector.extract_strided_slice %6 {offsets = [0, 64], sizes = [8, 8], strides = [1, 1]} : vector<8x96xf32> to vector<8x8xf32>
    %12 = arith.truncf %11 : vector<8x8xf32> to vector<8x8xbf16>
    %13 = tpu.transpose %10, [1, 0] : vector<8x8xbf16> -> vector<8x8xbf16>
    %cst_5 = arith.constant dense<0.000000e+00> : vector<8x8xf32>
    %14 = tpu.matmul %8, %13, %cst_5 {dimension_numbers = #tpu.dot_dimension_numbers<[1], [0], [0], [1], [0, 0, 1, 1], [], []>} : vector<8x8xbf16>, vector<8x8xbf16>, vector<8x8xf32> -> vector<8x8xf32>
    %cst_6 = arith.constant dense<0xFF800000> : vector<8xf32>
    %15 = vector.multi_reduction <maximumf>, %14, %cst_6 [1] : vector<8x8xf32> to vector<8xf32>
    %16 = vector.shape_cast %15 : vector<8xf32> to vector<8x1xf32>
    %17 = vector.broadcast %16 : vector<8x1xf32> to vector<8x8xf32>
    %18 = arith.subf %14, %17 : vector<8x8xf32>
    %19 = math.exp %18 : vector<8x8xf32>
    %cst_7 = arith.constant dense<0.000000e+00> : vector<8xf32>
    %20 = vector.multi_reduction <add>, %19, %cst_7 [1] : vector<8x8xf32> to vector<8xf32>
    %21 = vector.shape_cast %20 : vector<8xf32> to vector<8x1xf32>
    %22 = tpu.reciprocal %21 {approx = true} : vector<8x1xf32> -> vector<8x1xf32>
    %23 = vector.broadcast %22 : vector<8x1xf32> to vector<8x8xf32>
    %24 = arith.mulf %19, %23 : vector<8x8xf32>
    %25 = arith.truncf %24 : vector<8x8xf32> to vector<8x8xbf16>
    %cst_8 = arith.constant dense<0.000000e+00> : vector<8x8xf32>
    %26 = tpu.matmul %25, %12, %cst_8 {dimension_numbers = #tpu.dot_dimension_numbers<[1], [0], [0], [1], [0, 0, 1, 1], [], []>} : vector<8x8xbf16>, vector<8x8xbf16>, vector<8x8xf32> -> vector<8x8xf32>
    %27 = vector.extract_strided_slice %6 {offsets = [0, 8], sizes = [8, 8], strides = [1, 1]} : vector<8x96xf32> to vector<8x8xf32>
    %28 = arith.truncf %27 : vector<8x8xf32> to vector<8x8xbf16>
    %29 = vector.extract_strided_slice %6 {offsets = [0, 40], sizes = [8, 8], strides = [1, 1]} : vector<8x96xf32> to vector<8x8xf32>
    %30 = arith.truncf %29 : vector<8x8xf32> to vector<8x8xbf16>
    %31 = vector.extract_strided_slice %6 {offsets = [0, 72], sizes = [8, 8], strides = [1, 1]} : vector<8x96xf32> to vector<8x8xf32>
    %32 = arith.truncf %31 : vector<8x8xf32> to vector<8x8xbf16>
    %33 = tpu.transpose %30, [1, 0] : vector<8x8xbf16> -> vector<8x8xbf16>
    %cst_9 = arith.constant dense<0.000000e+00> : vector<8x8xf32>
    %34 = tpu.matmul %28, %33, %cst_9 {dimension_numbers = #tpu.dot_dimension_numbers<[1], [0], [0], [1], [0, 0, 1, 1], [], []>} : vector<8x8xbf16>, vector<8x8xbf16>, vector<8x8xf32> -> vector<8x8xf32>
    %cst_10 = arith.constant dense<0xFF800000> : vector<8xf32>
    %35 = vector.multi_reduction <maximumf>, %34, %cst_10 [1] : vector<8x8xf32> to vector<8xf32>
    %36 = vector.shape_cast %35 : vector<8xf32> to vector<8x1xf32>
    %37 = vector.broadcast %36 : vector<8x1xf32> to vector<8x8xf32>
    %38 = arith.subf %34, %37 : vector<8x8xf32>
    %39 = math.exp %38 : vector<8x8xf32>
    %cst_11 = arith.constant dense<0.000000e+00> : vector<8xf32>
    %40 = vector.multi_reduction <add>, %39, %cst_11 [1] : vector<8x8xf32> to vector<8xf32>
    %41 = vector.shape_cast %40 : vector<8xf32> to vector<8x1xf32>
    %42 = tpu.reciprocal %41 {approx = true} : vector<8x1xf32> -> vector<8x1xf32>
    %43 = vector.broadcast %42 : vector<8x1xf32> to vector<8x8xf32>
    %44 = arith.mulf %39, %43 : vector<8x8xf32>
    %45 = arith.truncf %44 : vector<8x8xf32> to vector<8x8xbf16>
    %cst_12 = arith.constant dense<0.000000e+00> : vector<8x8xf32>
    %46 = tpu.matmul %45, %32, %cst_12 {dimension_numbers = #tpu.dot_dimension_numbers<[1], [0], [0], [1], [0, 0, 1, 1], [], []>} : vector<8x8xbf16>, vector<8x8xbf16>, vector<8x8xf32> -> vector<8x8xf32>
    %47 = vector.extract_strided_slice %6 {offsets = [0, 16], sizes = [8, 8], strides = [1, 1]} : vector<8x96xf32> to vector<8x8xf32>
    %48 = arith.truncf %47 : vector<8x8xf32> to vector<8x8xbf16>
    %49 = vector.extract_strided_slice %6 {offsets = [0, 48], sizes = [8, 8], strides = [1, 1]} : vector<8x96xf32> to vector<8x8xf32>
    %50 = arith.truncf %49 : vector<8x8xf32> to vector<8x8xbf16>
    %51 = vector.extract_strided_slice %6 {offsets = [0, 80], sizes = [8, 8], strides = [1, 1]} : vector<8x96xf32> to vector<8x8xf32>
    %52 = arith.truncf %51 : vector<8x8xf32> to vector<8x8xbf16>
    %53 = tpu.transpose %50, [1, 0] : vector<8x8xbf16> -> vector<8x8xbf16>
    %cst_13 = arith.constant dense<0.000000e+00> : vector<8x8xf32>
    %54 = tpu.matmul %48, %53, %cst_13 {dimension_numbers = #tpu.dot_dimension_numbers<[1], [0], [0], [1], [0, 0, 1, 1], [], []>} : vector<8x8xbf16>, vector<8x8xbf16>, vector<8x8xf32> -> vector<8x8xf32>
    %cst_14 = arith.constant dense<0xFF800000> : vector<8xf32>
    %55 = vector.multi_reduction <maximumf>, %54, %cst_14 [1] : vector<8x8xf32> to vector<8xf32>
    %56 = vector.shape_cast %55 : vector<8xf32> to vector<8x1xf32>
    %57 = vector.broadcast %56 : vector<8x1xf32> to vector<8x8xf32>
    %58 = arith.subf %54, %57 : vector<8x8xf32>
    %59 = math.exp %58 : vector<8x8xf32>
    %cst_15 = arith.constant dense<0.000000e+00> : vector<8xf32>
    %60 = vector.multi_reduction <add>, %59, %cst_15 [1] : vector<8x8xf32> to vector<8xf32>
    %61 = vector.shape_cast %60 : vector<8xf32> to vector<8x1xf32>
    %62 = tpu.reciprocal %61 {approx = true} : vector<8x1xf32> -> vector<8x1xf32>
    %63 = vector.broadcast %62 : vector<8x1xf32> to vector<8x8xf32>
    %64 = arith.mulf %59, %63 : vector<8x8xf32>
    %65 = arith.truncf %64 : vector<8x8xf32> to vector<8x8xbf16>
    %cst_16 = arith.constant dense<0.000000e+00> : vector<8x8xf32>
    %66 = tpu.matmul %65, %52, %cst_16 {dimension_numbers = #tpu.dot_dimension_numbers<[1], [0], [0], [1], [0, 0, 1, 1], [], []>} : vector<8x8xbf16>, vector<8x8xbf16>, vector<8x8xf32> -> vector<8x8xf32>
    %67 = vector.extract_strided_slice %6 {offsets = [0, 24], sizes = [8, 8], strides = [1, 1]} : vector<8x96xf32> to vector<8x8xf32>
    %68 = arith.truncf %67 : vector<8x8xf32> to vector<8x8xbf16>
    %69 = vector.extract_strided_slice %6 {offsets = [0, 56], sizes = [8, 8], strides = [1, 1]} : vector<8x96xf32> to vector<8x8xf32>
    %70 = arith.truncf %69 : vector<8x8xf32> to vector<8x8xbf16>
    %71 = vector.extract_strided_slice %6 {offsets = [0, 88], sizes = [8, 8], strides = [1, 1]} : vector<8x96xf32> to vector<8x8xf32>
    %72 = arith.truncf %71 : vector<8x8xf32> to vector<8x8xbf16>
    %73 = tpu.transpose %70, [1, 0] : vector<8x8xbf16> -> vector<8x8xbf16>
    %cst_17 = arith.constant dense<0.000000e+00> : vector<8x8xf32>
    %74 = tpu.matmul %68, %73, %cst_17 {dimension_numbers = #tpu.dot_dimension_numbers<[1], [0], [0], [1], [0, 0, 1, 1], [], []>} : vector<8x8xbf16>, vector<8x8xbf16>, vector<8x8xf32> -> vector<8x8xf32>
    %cst_18 = arith.constant dense<0xFF800000> : vector<8xf32>
    %75 = vector.multi_reduction <maximumf>, %74, %cst_18 [1] : vector<8x8xf32> to vector<8xf32>
    %76 = vector.shape_cast %75 : vector<8xf32> to vector<8x1xf32>
    %77 = vector.broadcast %76 : vector<8x1xf32> to vector<8x8xf32>
    %78 = arith.subf %74, %77 : vector<8x8xf32>
    %79 = math.exp %78 : vector<8x8xf32>
    %cst_19 = arith.constant dense<0.000000e+00> : vector<8xf32>
    %80 = vector.multi_reduction <add>, %79, %cst_19 [1] : vector<8x8xf32> to vector<8xf32>
    %81 = vector.shape_cast %80 : vector<8xf32> to vector<8x1xf32>
    %82 = tpu.reciprocal %81 {approx = true} : vector<8x1xf32> -> vector<8x1xf32>
    %83 = vector.broadcast %82 : vector<8x1xf32> to vector<8x8xf32>
    %84 = arith.mulf %79, %83 : vector<8x8xf32>
    %85 = arith.truncf %84 : vector<8x8xf32> to vector<8x8xbf16>
    %cst_20 = arith.constant dense<0.000000e+00> : vector<8x8xf32>
    %86 = tpu.matmul %85, %72, %cst_20 {dimension_numbers = #tpu.dot_dimension_numbers<[1], [0], [0], [1], [0, 0, 1, 1], [], []>} : vector<8x8xbf16>, vector<8x8xbf16>, vector<8x8xf32> -> vector<8x8xf32>
    %87 = tpu.concatenate %26, %46, %66, %86 in 1 : vector<8x8xf32>, vector<8x8xf32>, vector<8x8xf32>, vector<8x8xf32> -> vector<8x32xf32>
    %88 = vector.extract_strided_slice %5 {offsets = [8, 0], sizes = [8, 96], strides = [1, 1]} : vector<16x96xf32> to vector<8x96xf32>
    %89 = vector.extract_strided_slice %88 {offsets = [0, 0], sizes = [8, 8], strides = [1, 1]} : vector<8x96xf32> to vector<8x8xf32>
    %90 = arith.truncf %89 : vector<8x8xf32> to vector<8x8xbf16>
    %91 = vector.extract_strided_slice %88 {offsets = [0, 32], sizes = [8, 8], strides = [1, 1]} : vector<8x96xf32> to vector<8x8xf32>
    %92 = arith.truncf %91 : vector<8x8xf32> to vector<8x8xbf16>
    %93 = vector.extract_strided_slice %88 {offsets = [0, 64], sizes = [8, 8], strides = [1, 1]} : vector<8x96xf32> to vector<8x8xf32>
    %94 = arith.truncf %93 : vector<8x8xf32> to vector<8x8xbf16>
    %95 = tpu.transpose %92, [1, 0] : vector<8x8xbf16> -> vector<8x8xbf16>
    %cst_21 = arith.constant dense<0.000000e+00> : vector<8x8xf32>
    %96 = tpu.matmul %90, %95, %cst_21 {dimension_numbers = #tpu.dot_dimension_numbers<[1], [0], [0], [1], [0, 0, 1, 1], [], []>} : vector<8x8xbf16>, vector<8x8xbf16>, vector<8x8xf32> -> vector<8x8xf32>
    %cst_22 = arith.constant dense<0xFF800000> : vector<8xf32>
    %97 = vector.multi_reduction <maximumf>, %96, %cst_22 [1] : vector<8x8xf32> to vector<8xf32>
    %98 = vector.shape_cast %97 : vector<8xf32> to vector<8x1xf32>
    %99 = vector.broadcast %98 : vector<8x1xf32> to vector<8x8xf32>
    %100 = arith.subf %96, %99 : vector<8x8xf32>
    %101 = math.exp %100 : vector<8x8xf32>
    %cst_23 = arith.constant dense<0.000000e+00> : vector<8xf32>
    %102 = vector.multi_reduction <add>, %101, %cst_23 [1] : vector<8x8xf32> to vector<8xf32>
    %103 = vector.shape_cast %102 : vector<8xf32> to vector<8x1xf32>
    %104 = tpu.reciprocal %103 {approx = true} : vector<8x1xf32> -> vector<8x1xf32>
    %105 = vector.broadcast %104 : vector<8x1xf32> to vector<8x8xf32>
    %106 = arith.mulf %101, %105 : vector<8x8xf32>
    %107 = arith.truncf %106 : vector<8x8xf32> to vector<8x8xbf16>
    %cst_24 = arith.constant dense<0.000000e+00> : vector<8x8xf32>
    %108 = tpu.matmul %107, %94, %cst_24 {dimension_numbers = #tpu.dot_dimension_numbers<[1], [0], [0], [1], [0, 0, 1, 1], [], []>} : vector<8x8xbf16>, vector<8x8xbf16>, vector<8x8xf32> -> vector<8x8xf32>
    %109 = vector.extract_strided_slice %88 {offsets = [0, 8], sizes = [8, 8], strides = [1, 1]} : vector<8x96xf32> to vector<8x8xf32>
    %110 = arith.truncf %109 : vector<8x8xf32> to vector<8x8xbf16>
    %111 = vector.extract_strided_slice %88 {offsets = [0, 40], sizes = [8, 8], strides = [1, 1]} : vector<8x96xf32> to vector<8x8xf32>
    %112 = arith.truncf %111 : vector<8x8xf32> to vector<8x8xbf16>
    %113 = vector.extract_strided_slice %88 {offsets = [0, 72], sizes = [8, 8], strides = [1, 1]} : vector<8x96xf32> to vector<8x8xf32>
    %114 = arith.truncf %113 : vector<8x8xf32> to vector<8x8xbf16>
    %115 = tpu.transpose %112, [1, 0] : vector<8x8xbf16> -> vector<8x8xbf16>
    %cst_25 = arith.constant dense<0.000000e+00> : vector<8x8xf32>
    %116 = tpu.matmul %110, %115, %cst_25 {dimension_numbers = #tpu.dot_dimension_numbers<[1], [0], [0], [1], [0, 0, 1, 1], [], []>} : vector<8x8xbf16>, vector<8x8xbf16>, vector<8x8xf32> -> vector<8x8xf32>
    %cst_26 = arith.constant dense<0xFF800000> : vector<8xf32>
    %117 = vector.multi_reduction <maximumf>, %116, %cst_26 [1] : vector<8x8xf32> to vector<8xf32>
    %118 = vector.shape_cast %117 : vector<8xf32> to vector<8x1xf32>
    %119 = vector.broadcast %118 : vector<8x1xf32> to vector<8x8xf32>
    %120 = arith.subf %116, %119 : vector<8x8xf32>
    %121 = math.exp %120 : vector<8x8xf32>
    %cst_27 = arith.constant dense<0.000000e+00> : vector<8xf32>
    %122 = vector.multi_reduction <add>, %121, %cst_27 [1] : vector<8x8xf32> to vector<8xf32>
    %123 = vector.shape_cast %122 : vector<8xf32> to vector<8x1xf32>
    %124 = tpu.reciprocal %123 {approx = true} : vector<8x1xf32> -> vector<8x1xf32>
    %125 = vector.broadcast %124 : vector<8x1xf32> to vector<8x8xf32>
    %126 = arith.mulf %121, %125 : vector<8x8xf32>
    %127 = arith.truncf %126 : vector<8x8xf32> to vector<8x8xbf16>
    %cst_28 = arith.constant dense<0.000000e+00> : vector<8x8xf32>
    %128 = tpu.matmul %127, %114, %cst_28 {dimension_numbers = #tpu.dot_dimension_numbers<[1], [0], [0], [1], [0, 0, 1, 1], [], []>} : vector<8x8xbf16>, vector<8x8xbf16>, vector<8x8xf32> -> vector<8x8xf32>
    %129 = vector.extract_strided_slice %88 {offsets = [0, 16], sizes = [8, 8], strides = [1, 1]} : vector<8x96xf32> to vector<8x8xf32>
    %130 = arith.truncf %129 : vector<8x8xf32> to vector<8x8xbf16>
    %131 = vector.extract_strided_slice %88 {offsets = [0, 48], sizes = [8, 8], strides = [1, 1]} : vector<8x96xf32> to vector<8x8xf32>
    %132 = arith.truncf %131 : vector<8x8xf32> to vector<8x8xbf16>
    %133 = vector.extract_strided_slice %88 {offsets = [0, 80], sizes = [8, 8], strides = [1, 1]} : vector<8x96xf32> to vector<8x8xf32>
    %134 = arith.truncf %133 : vector<8x8xf32> to vector<8x8xbf16>
    %135 = tpu.transpose %132, [1, 0] : vector<8x8xbf16> -> vector<8x8xbf16>
    %cst_29 = arith.constant dense<0.000000e+00> : vector<8x8xf32>
    %136 = tpu.matmul %130, %135, %cst_29 {dimension_numbers = #tpu.dot_dimension_numbers<[1], [0], [0], [1], [0, 0, 1, 1], [], []>} : vector<8x8xbf16>, vector<8x8xbf16>, vector<8x8xf32> -> vector<8x8xf32>
    %cst_30 = arith.constant dense<0xFF800000> : vector<8xf32>
    %137 = vector.multi_reduction <maximumf>, %136, %cst_30 [1] : vector<8x8xf32> to vector<8xf32>
    %138 = vector.shape_cast %137 : vector<8xf32> to vector<8x1xf32>
    %139 = vector.broadcast %138 : vector<8x1xf32> to vector<8x8xf32>
    %140 = arith.subf %136, %139 : vector<8x8xf32>
    %141 = math.exp %140 : vector<8x8xf32>
    %cst_31 = arith.constant dense<0.000000e+00> : vector<8xf32>
    %142 = vector.multi_reduction <add>, %141, %cst_31 [1] : vector<8x8xf32> to vector<8xf32>
    %143 = vector.shape_cast %142 : vector<8xf32> to vector<8x1xf32>
    %144 = tpu.reciprocal %143 {approx = true} : vector<8x1xf32> -> vector<8x1xf32>
    %145 = vector.broadcast %144 : vector<8x1xf32> to vector<8x8xf32>
    %146 = arith.mulf %141, %145 : vector<8x8xf32>
    %147 = arith.truncf %146 : vector<8x8xf32> to vector<8x8xbf16>
    %cst_32 = arith.constant dense<0.000000e+00> : vector<8x8xf32>
    %148 = tpu.matmul %147, %134, %cst_32 {dimension_numbers = #tpu.dot_dimension_numbers<[1], [0], [0], [1], [0, 0, 1, 1], [], []>} : vector<8x8xbf16>, vector<8x8xbf16>, vector<8x8xf32> -> vector<8x8xf32>
    %149 = vector.extract_strided_slice %88 {offsets = [0, 24], sizes = [8, 8], strides = [1, 1]} : vector<8x96xf32> to vector<8x8xf32>
    %150 = arith.truncf %149 : vector<8x8xf32> to vector<8x8xbf16>
    %151 = vector.extract_strided_slice %88 {offsets = [0, 56], sizes = [8, 8], strides = [1, 1]} : vector<8x96xf32> to vector<8x8xf32>
    %152 = arith.truncf %151 : vector<8x8xf32> to vector<8x8xbf16>
    %153 = vector.extract_strided_slice %88 {offsets = [0, 88], sizes = [8, 8], strides = [1, 1]} : vector<8x96xf32> to vector<8x8xf32>
    %154 = arith.truncf %153 : vector<8x8xf32> to vector<8x8xbf16>
    %155 = tpu.transpose %152, [1, 0] : vector<8x8xbf16> -> vector<8x8xbf16>
    %cst_33 = arith.constant dense<0.000000e+00> : vector<8x8xf32>
    %156 = tpu.matmul %150, %155, %cst_33 {dimension_numbers = #tpu.dot_dimension_numbers<[1], [0], [0], [1], [0, 0, 1, 1], [], []>} : vector<8x8xbf16>, vector<8x8xbf16>, vector<8x8xf32> -> vector<8x8xf32>
    %cst_34 = arith.constant dense<0xFF800000> : vector<8xf32>
    %157 = vector.multi_reduction <maximumf>, %156, %cst_34 [1] : vector<8x8xf32> to vector<8xf32>
    %158 = vector.shape_cast %157 : vector<8xf32> to vector<8x1xf32>
    %159 = vector.broadcast %158 : vector<8x1xf32> to vector<8x8xf32>
    %160 = arith.subf %156, %159 : vector<8x8xf32>
    %161 = math.exp %160 : vector<8x8xf32>
    %cst_35 = arith.constant dense<0.000000e+00> : vector<8xf32>
    %162 = vector.multi_reduction <add>, %161, %cst_35 [1] : vector<8x8xf32> to vector<8xf32>
    %163 = vector.shape_cast %162 : vector<8xf32> to vector<8x1xf32>
    %164 = tpu.reciprocal %163 {approx = true} : vector<8x1xf32> -> vector<8x1xf32>
    %165 = vector.broadcast %164 : vector<8x1xf32> to vector<8x8xf32>
    %166 = arith.mulf %161, %165 : vector<8x8xf32>
    %167 = arith.truncf %166 : vector<8x8xf32> to vector<8x8xbf16>
    %cst_36 = arith.constant dense<0.000000e+00> : vector<8x8xf32>
    %168 = tpu.matmul %167, %154, %cst_36 {dimension_numbers = #tpu.dot_dimension_numbers<[1], [0], [0], [1], [0, 0, 1, 1], [], []>} : vector<8x8xbf16>, vector<8x8xbf16>, vector<8x8xf32> -> vector<8x8xf32>
    %169 = tpu.concatenate %108, %128, %148, %168 in 1 : vector<8x8xf32>, vector<8x8xf32>, vector<8x8xf32>, vector<8x8xf32> -> vector<8x32xf32>
    %170 = tpu.concatenate %87, %169 in 0 : vector<8x32xf32>, vector<8x32xf32> -> vector<16x32xf32>
    %171 = arith.truncf %170 : vector<16x32xf32> to vector<16x32xbf16>
    %c0_37 = arith.constant 0 : index
    %c0_38 = arith.constant 0 : index
    %172 = vector.load %arg4[%c0_37, %c0_38] : memref<32x32xbf16, #tpu.memory_space<vmem>>, vector<32x32xbf16>
    %cst_39 = arith.constant dense<0.000000e+00> : vector<16x32xf32>
    %173 = tpu.matmul %171, %172, %cst_39 {dimension_numbers = #tpu.dot_dimension_numbers<[1], [0], [0], [1], [0, 0, 1, 1], [], []>} : vector<16x32xbf16>, vector<32x32xbf16>, vector<16x32xf32> -> vector<16x32xf32>
    %c0_40 = arith.constant 0 : index
    %c0_41 = arith.constant 0 : index
    %174 = vector.load %arg5[%c0_40, %c0_41] : memref<1x32xf32, #tpu.memory_space<vmem>>, vector<1x32xf32>
    %175 = vector.broadcast %174 : vector<1x32xf32> to vector<16x32xf32>
    %176 = arith.addf %173, %175 : vector<16x32xf32>
    %c0_42 = arith.constant 0 : index
    %c0_43 = arith.constant 0 : index
    %177 = vector.load %arg6[%c0_42, %c0_43] : memref<16x32xf32, #tpu.memory_space<vmem>>, vector<16x32xf32>
    tpu.vector_store %arg6[%c0_42, %c0_43], %176 {strides = array<i32>} : memref<16x32xf32, #tpu.memory_space<vmem>>, vector<16x32xf32>,
    return
  }
  func.func @transform_0(%arg0: i32) -> (i32, i32) {
    %c0_i32 = arith.constant 0 : i32
    %c0_i32_0 = arith.constant 0 : i32
    return %arg0, %c0_i32 : i32, i32
  }
  func.func @transform_1(%arg0: i32) -> (i32, i32) {
    %c0_i32 = arith.constant 0 : i32
    %c0_i32_0 = arith.constant 0 : i32
    %c0_i32_1 = arith.constant 0 : i32
    return %c0_i32, %c0_i32_0 : i32, i32
  }
  func.func @transform_2(%arg0: i32) -> (i32, i32) {
    %c0_i32 = arith.constant 0 : i32
    %c0_i32_0 = arith.constant 0 : i32
    %c0_i32_1 = arith.constant 0 : i32
    return %c0_i32, %c0_i32_0 : i32, i32
  }
  func.func @transform_3(%arg0: i32) -> (i32, i32) {
    %c0_i32 = arith.constant 0 : i32
    %c0_i32_0 = arith.constant 0 : i32
    %c0_i32_1 = arith.constant 0 : i32
    return %c0_i32, %c0_i32_0 : i32, i32
  }
  func.func @transform_4(%arg0: i32) -> (i32, i32) {
    %c0_i32 = arith.constant 0 : i32
    %c0_i32_0 = arith.constant 0 : i32
    %c0_i32_1 = arith.constant 0 : i32
    return %c0_i32, %c0_i32_0 : i32, i32
  }
  func.func @transform_5(%arg0: i32) -> (i32, i32) {
    %c0_i32 = arith.constant 0 : i32
    %c0_i32_0 = arith.constant 0 : i32
    return %arg0, %c0_i32 : i32, i32
  }
}

</mosaic_0001>

<bundles_post_ra>
// kernel: tpu_custom_call.1
= control target key start
LH: loop header
LB: loop body
LE: loop exit
PB: predicated region body
PF: predicated region fallthrough
CT: control target
= control target key end

     0   :  { %10 = vsyncpa [#allocation3], 0  ;;  %s1793_s0 = inlined_call_operand.hbm [shape: bf16[16,32], index: 0, kind: input, shape index: {}]   ;;  %s1794_s1 = inlined_call_operand.hbm [shape: bf16[32,96], index: 1, kind: input, shape index: {}]   ;;  %s1795_s2 = inlined_call_operand.vmem [shape: f32[1,96], index: 2, kind: input, shape index: {}]   ;;  %s1796_s3 = inlined_call_operand.hbm [shape: bf16[32,32], index: 3, kind: input, shape index: {}]   ;;  %s1797_s4 = inlined_call_operand.vmem [shape: f32[1,32], index: 4, kind: input, shape index: {}]   ;;  %s1798_s5 = inlined_call_operand.hbm [shape: f32[16,32], index: 5, kind: output, shape index: {}]  }
   0x1   :  { %11 = vsyncpa [#allocation6], 0 }
   0x2   :  { %12 = vsyncpa [#allocation4], 0  ;;  %s1483_s18 = smov [#allocation5]   ;;  %s1484_s20 = smov [#allocation2]  }
   0x3   :  { %s30_s19 = sshll.u32 %s1483_s18, 4  ;;  %s18_s21 = sshll.u32 %s1484_s20, 4  ;;  %s31_s19 = int_to_ptr.vmem [resolvable:$true] %s30_s19  ;;  %s1535_s21 = int_to_ptr.vmem [resolvable:$true] %s18_s21 }
   0x4   :  { %s1389_s24 = scalar_lea.hbm %s1794_s1, 256 }
   0x5   :  { %p1390_p0 = scmp.ne.s32.totalorder %s1794_s1, %s1389_s24  ;;  %p1393_p1 = scmp.lt.u32.totalorder %s1389_s24, %s1794_s1 }
   0x7   :  { %p1395_p2 = pnand %p1393_p1, %p1390_p0 }
   0x9   :  { %1398 = shalt.err (!%p1395_p2)
}
   0xa   :  { %s1399_s29 = scalar_lea.vmem %s31_s19, 256  ;;  %p1404_p4 = scmp.lt.s32.totalorder %s31_s19, %s31_s19 }
   0xb   :  { %p1400_p3 = scmp.ne.s32.totalorder %s31_s19, %s1399_s29  ;;  %p1405_p5 = scmp.lt.s32.totalorder %s1399_s29, %s1399_s29 }
   0xd   :  { %p1406_p6 = por %p1405_p5, %p1404_p4 }
   0xf   :  { %p1407_p7 = pnand %p1406_p6, %p1400_p3 }
  0x11   :  { %1410 = shalt.err (!%p1407_p7)
}
  0x12   :  { %s1485_s30 = smov 64   ;;  %s1486_s6 = smov 4  }
  0x13   :  { %36 = dma.hbm_to_vmem [thread:$0]  %s1794_s1, 256, %s31_s19, [#allocation6], %s1485_s30, %s1485_s30, %s1486_s6  }
  0x14   :  { %s1411_s11 = scalar_lea.hbm %s1793_s0, 128 }
  0x15   :  { %p1412_p8 = scmp.ne.s32.totalorder %s1793_s0, %s1411_s11  ;;  %p1415_p9 = scmp.lt.u32.totalorder %s1411_s11, %s1793_s0 }
  0x17   :  { %p1417_p10 = pnand %p1415_p9, %p1412_p8 }
  0x19   :  { %1420 = shalt.err (!%p1417_p10)
}
  0x1a   :  { %s1421_s16 = scalar_lea.vmem %s1535_s21, 128  ;;  %p1426_p12 = scmp.lt.s32.totalorder %s1535_s21, %s1535_s21 }
  0x1b   :  { %p1422_p11 = scmp.ne.s32.totalorder %s1535_s21, %s1421_s16  ;;  %p1427_p13 = scmp.lt.s32.totalorder %s1421_s16, %s1421_s16 }
  0x1d   :  { %p1428_p0 = por %p1427_p13, %p1426_p12 }
  0x1f   :  { %p1429_p1 = pnand %p1428_p0, %p1422_p11 }
  0x21   :  { %1432 = shalt.err (!%p1429_p1)
}
  0x22   :  { %24 = dma.hbm_to_vmem [thread:$0]  %s1793_s0, 128, %s1535_s21, [#allocation3], %s1485_s30, %s1485_s30, %s1486_s6  }
  0x23   :  { %s1487_s18 = smov [#allocation7]   ;;  %s1433_s23 = scalar_lea.hbm %s1796_s3, 256 }
  0x24   :  { %s44_s19 = sshll.u32 %s1487_s18, 4  ;;  %p1434_p2 = scmp.ne.s32.totalorder %s1796_s3, %s1433_s23  ;;  %s45_s19 = int_to_ptr.vmem [resolvable:$true] %s44_s19 }
  0x25   :  { %p1437_p3 = scmp.lt.u32.totalorder %s1433_s23, %s1796_s3 }
  0x27   :  { %p1439_p4 = pnand %p1437_p3, %p1434_p2 }
  0x29   :  { %1442 = shalt.err (!%p1439_p4)
}
  0x2a   :  { %s1443_s28 = scalar_lea.vmem %s45_s19, 256  ;;  %p1448_p6 = scmp.lt.s32.totalorder %s45_s19, %s45_s19 }
  0x2b   :  { %p1444_p5 = scmp.ne.s32.totalorder %s45_s19, %s1443_s28  ;;  %p1449_p7 = scmp.lt.s32.totalorder %s1443_s28, %s1443_s28 }
  0x2d   :  { %p1450_p8 = por %p1449_p7, %p1448_p6 }
  0x2f   :  { %p1451_p9 = pnand %p1450_p8, %p1444_p5 }
  0x31   :  { %1454 = shalt.err (!%p1451_p9)
}
  0x32   :  { %50 = dma.hbm_to_vmem [thread:$0]  %s1796_s3, 256, %s45_s19, [#allocation6], %s1485_s30, %s1485_s30, %s1486_s6  }
  0x33   :  { %1477 = dma.done.wait [#allocation3], 128  }
  0x34   :  { %1478 = vsyncadd [#allocation3], 4294967168 }
  0x35   :  { %1479 = dma.done.wait [#allocation6], 512  }
  0x36   :  { %1480 = vsyncadd [#allocation6], 4294966784  ;;  %v1488_v0 = vmov 0.0   ;;  %vm1489_vm0 = vmmov 0   ;;  %v1352_v1 = vld [vmem:[#allocation5] sm:$0xff]   ;;  %v1353_v2 = vld [vmem:[#allocation5 + $0x8] sm:$0xff]  }
  0x37   :  { %1203 = vmatprep.subr.bf16.mxu0 %v1488_v0  ;;  %1207 = vmatprep.mubr.msk.bf16.mxu0 %vm1489_vm0, %v1488_v0  ;;  %v1354_v3 = vld [vmem:[#allocation2] sm:$0xff]   ;;  %vm93_vm1 = vcmask 261120   ;;  %s1490_s6 = smov 120   ;;  %s1491_s7 = smov 96   ;;  %vm142_vm2 = vcmask 64512   ;;  %vm206_vm3 = vcmask 1043456  }
  0x38   :  { %1211 = vmatprep.subr.bf16.mxu1 %v1488_v0  ;;  %1213 = vmatprep.mubr.msk.bf16.mxu1 %vm1489_vm0, %v1488_v0  ;;  %v1140_v4 = vld [vmem:[%s1795_s2] ss:$0 sm:$0xff]  ;;  %s1492_s8 = smov 80   ;;  %s1493_s9 = smov 88   ;;  %vm593_vm4 = vcmask 130048   ;;  %vm595_vm5 = vcmask 195584  }
  0x39   :  { %1204 = vmatpush3.bf16.msra.mxu0 %v1352_v1  ;;  %s1494_s2 = smov 72   ;;  %s1495_s10 = smov 112  }
  0x3a   :  { %1205 = vmatprep.subr.bf16.mxu0 %v1488_v0  ;;  %s1496_s11 = smov 104   ;;  %s1497_s12 = smov 56  }
  0x3b   :  { %s1498_s13 = smov 48   ;;  %s1499_s14 = smov 40  }
  0x3c   :  { %s1501_s15 = smov 16   ;;  %s1502_s16 = smov 24  }
  0x3d   :  { %1206 = vmatpush3.bf16.msra.mxu0 %v1353_v2  ;;  %s1503_s18 = smov [#allocation8]  }
  0x3e   :  { %1217 = vmatprep.subr.bf16.mxu0 %v1488_v0  ;;  %s1127_s19 = sshll.u32 %s1503_s18, 4  ;;  %s1128_s19 = int_to_ptr.vmem [resolvable:$true] %s1127_s19 }
  0x3f   :  { %s1455_s20 = scalar_lea.vmem %s1128_s19, 256  ;;  %p1460_p11 = scmp.lt.s32.totalorder %s1128_s19, %s1128_s19 }
  0x40   :  { %1208 = vmatmul.mubr.msk.bf16.vlgmr.msra.gmra.mrb[0].mxu0 %vm93_vm1, %v1354_v3  ;;  %p1456_p10 = scmp.ne.s32.totalorder %s1128_s19, %s1455_s20  ;;  %p1461_p12 = scmp.lt.s32.totalorder %s1455_s20, %s1455_s20 }
  0x41   :  { %1219 = vmatprep.mubr.msk.bf16.mxu0 %vm1489_vm0, %v1488_v0 }
  0x42   :  { %p1462_p13 = por %p1461_p12, %p1460_p11 }
  0x44   :  { %p1463_p0 = pnand %p1462_p13, %p1456_p10 }
 0x113   :  { %v131_v5 = vpop.f32.mrb[0].mxu0 }
 0x114   :  { %v132_v6 = vadd.f32 %v1140_v4, %v131_v5  ;;  %v1209_v7 = vpop.f32.mrb[1].mxu0 }
 0x115   :  { %v134_v8 = vpop.f32.mrb[2].mxu0 }
 0x116   :  { %v1601_v9 = vpack.c.bf16 %v132_v6, %v132_v6  ;;  %v1210_v10 = vpop.f32.mrb[3].mxu0  ;;  %v135_v11 = vadd.f32 %v1140_v4, %v134_v8 }
 0x118   :  { %250 = vrot.lane.b32.xlu1 %v1601_v9, %s1490_s6  ;;  %140 = vrot.lane.b32.xlu0 %v1601_v9, %s1491_s7  ;;  %v1609_v12 = vpack.c.bf16 %v135_v11, %v135_v11 }
 0x11c   :  { %362 = vrot.lane.b32.xlu1 %v1601_v9, %s1492_s8  ;;  %252 = vrot.lane.b32.xlu0 %v1601_v9, %s1493_s9 }
 0x120   :  { %472 = vrot.lane.b32.xlu1 %v1601_v9, %s1494_s2  ;;  %360 = vrot.lane.b32.xlu0 %v1601_v9, %s1495_s10 }
 0x124   :  { %470 = vrot.lane.b32.xlu0 %v1601_v9, %s1496_s11  ;;  %599 = vrot.lane.b32.xlu1 %v1609_v12, %s1491_s7 }
 0x128   :  { %709 = vrot.lane.b32.xlu0 %v1609_v12, %s1493_s9  ;;  %707 = vrot.lane.b32.xlu1 %v1609_v12, %s1490_s6 }
 0x12c   :  { %819 = vrot.lane.b32.xlu0 %v1609_v12, %s1492_s8  ;;  %817 = vrot.lane.b32.xlu1 %v1609_v12, %s1495_s10 }
 0x130   :  { %929 = vrot.lane.b32.xlu0 %v1609_v12, %s1494_s2  ;;  %927 = vrot.lane.b32.xlu1 %v1609_v12, %s1496_s11 }
 0x18a   :  { %v141_v13 = vpop.permute.xlu0 %140  ;;  %v251_v16 = vpop.permute.xlu1 %250 }
 0x18b   :  { %v147_v14 = vsel %vm142_vm2, %v141_v13, 0 }
 0x18c   :  { %1212 = vmatpush3.bf16.xpose.msra.mxu1 %v147_v14 }
 0x18d   :  { %1223 = vmatprep.subr.bf16.mxu1 %v1488_v0 }
 0x18e   :  { %v253_v15 = vpop.permute.xlu0 %252  ;;  %v363_v18 = vpop.permute.xlu1 %362 }
 0x18f   :  { %v258_v17 = vsel %vm142_vm2, %v253_v15, 0  ;;  %v368_v19 = vsel %vm142_vm2, %v363_v18, 0 }
 0x192   :  { %v473_v20 = vpop.permute.xlu1 %472  ;;  %v361_v21 = vpop.permute.xlu0 %360 }
 0x193   :  { %1214 = vmatmul.mubr.msk.bf16.vlgmr.msra.gmra.mrb[0].mxu1 %vm142_vm2, %v1601_v9  ;;  %v478_v22 = vsel %vm142_vm2, %v473_v20, 0 }
 0x194   :  { %1224 = vmatpush3.bf16.xpose.msra.mxu1 %v258_v17  ;;  %1225 = vmatprep.mubr.msk.bf16.mxu1 %vm1489_vm0, %v1488_v0 }
 0x195   :  { %1235 = vmatprep.subr.bf16.mxu1 %v1488_v0 }
 0x196   :  { %v600_v23 = vpop.permute.xlu1 %599  ;;  %v471_v24 = vpop.permute.xlu0 %470 }
 0x197   :  { %v605_v25 = vsel %vm142_vm2, %v600_v23, 0 }
 0x19a   :  { %v710_v26 = vpop.permute.xlu0 %709  ;;  %v708_v29 = vpop.permute.xlu1 %707 }
 0x19b   :  { %1226 = vmatmul.mubr.msk.bf16.vlgmr.msra.gmra.mrb[4].mxu1 %vm142_vm2, %v251_v16  ;;  %v715_v27 = vsel %vm142_vm2, %v710_v26, 0 }
 0x19c   :  { %1236 = vmatpush3.bf16.xpose.msra.mxu1 %v368_v19  ;;  %1237 = vmatprep.mubr.msk.bf16.mxu1 %vm1489_vm0, %v1488_v0 }
 0x19d   :  { %1247 = vmatprep.subr.bf16.mxu1 %v1488_v0 }
 0x19e   :  { %v820_v28 = vpop.permute.xlu0 %819  ;;  %v818_v32 = vpop.permute.xlu1 %817 }
 0x19f   :  { %v825_v30 = vsel %vm142_vm2, %v820_v28, 0 }
 0x1a2   :  { %v930_v31 = vpop.permute.xlu0 %929  ;;  %v928_v34 = vpop.permute.xlu1 %927 }
 0x1a3   :  { %1238 = vmatmul.mubr.msk.bf16.vlgmr.msra.gmra.mrb[8].mxu1 %vm142_vm2, %v361_v21  ;;  %v935_v33 = vsel %vm142_vm2, %v930_v31, 0 }
 0x1a4   :  { %1248 = vmatpush3.bf16.xpose.msra.mxu1 %v478_v22  ;;  %1249 = vmatprep.mubr.msk.bf16.mxu1 %vm1489_vm0, %v1488_v0 }
 0x1a5   :  { %1259 = vmatprep.subr.bf16.mxu1 %v1488_v0 }
 0x1ab   :  { %1250 = vmatmul.mubr.msk.bf16.vlgmr.msra.gmra.mrb[12].mxu1 %vm142_vm2, %v471_v24 }
 0x1ac   :  { %1260 = vmatpush3.bf16.xpose.msra.mxu1 %v605_v25  ;;  %1261 = vmatprep.mubr.msk.bf16.mxu1 %vm1489_vm0, %v1488_v0 }
 0x1ad   :  { %1271 = vmatprep.subr.bf16.mxu1 %v1488_v0 }
 0x1b3   :  { %1262 = vmatmul.mubr.msk.bf16.vlgmr.msra.gmra.mrb[16].mxu1 %vm142_vm2, %v1609_v12 }
 0x1b4   :  { %1272 = vmatpush3.bf16.xpose.msra.mxu1 %v715_v27  ;;  %1273 = vmatprep.mubr.msk.bf16.mxu1 %vm1489_vm0, %v1488_v0 }
 0x1b5   :  { %1283 = vmatprep.subr.bf16.mxu1 %v1488_v0 }
 0x1bb   :  { %1274 = vmatmul.mubr.msk.bf16.vlgmr.msra.gmra.mrb[20].mxu1 %vm142_vm2, %v708_v29 }
 0x1bc   :  { %1284 = vmatpush3.bf16.xpose.msra.mxu1 %v825_v30  ;;  %1285 = vmatprep.mubr.msk.bf16.mxu1 %vm1489_vm0, %v1488_v0 }
 0x1bd   :  { %1295 = vmatprep.subr.bf16.mxu1 %v1488_v0 }
 0x1c3   :  { %1286 = vmatmul.mubr.msk.bf16.vlgmr.msra.gmra.mrb[24].mxu1 %vm142_vm2, %v818_v32 }
 0x1c4   :  { %1296 = vmatpush3.bf16.xpose.msra.mxu1 %v935_v33  ;;  %1297 = vmatprep.mubr.msk.bf16.mxu1 %vm1489_vm0, %v1488_v0 }
 0x1c5   :  { %1307 = vmatprep.subr.bf16.mxu1 %v1488_v0 }
 0x1cb   :  { %1298 = vmatmul.mubr.msk.bf16.vlgmr.msra.gmra.mrb[28].mxu1 %vm142_vm2, %v928_v34 }
 0x1cc   :  { %1311 = vmatprep.mubr.msk.bf16.mxu1 %vm1489_vm0, %v1488_v0 }
 0x266   :  { %v183_v35 = vpop.f32.mrb[0].mxu1 }
 0x267   :  { %v1215_v36 = vpop.f32.mrb[1].mxu1  ;;  %v189_v37 = vsel %vm142_vm2, %v183_v35, -inf }
 0x268   :  { %v186_v38 = vpop.f32.mrb[2].mxu1  ;;  %190 = vmax.xlane.f32.xlu0 %v189_v37 }
 0x269   :  { %v1216_v39 = vpop.f32.mrb[3].mxu1 }
 0x26e   :  { %v294_v40 = vpop.f32.mrb[4].mxu1 }
 0x26f   :  { %v1227_v41 = vpop.f32.mrb[5].mxu1  ;;  %v300_v42 = vsel %vm142_vm2, %v294_v40, -inf }
 0x270   :  { %v297_v43 = vpop.f32.mrb[6].mxu1  ;;  %301 = vmax.xlane.f32.xlu1 %v300_v42 }
 0x271   :  { %v1228_v44 = vpop.f32.mrb[7].mxu1 }
 0x276   :  { %v404_v45 = vpop.f32.mrb[8].mxu1 }
 0x277   :  { %v1239_v46 = vpop.f32.mrb[9].mxu1  ;;  %v410_v47 = vsel %vm142_vm2, %v404_v45, -inf }
 0x278   :  { %v407_v48 = vpop.f32.mrb[10].mxu1  ;;  %411 = vmax.xlane.f32.xlu0 %v410_v47 }
 0x279   :  { %v1240_v49 = vpop.f32.mrb[11].mxu1 }
 0x27e   :  { %v1664_v50 = vpop.f32.mrb[12].mxu1 }
 0x27f   :  { %v1251_v51 = vpop.f32.mrb[13].mxu1  ;;  %v520_v52 = vsel %vm142_vm2, %v1664_v50, -inf }
 0x280   :  { %v517_v53 = vpop.f32.mrb[14].mxu1  ;;  %521 = vmax.xlane.f32.xlu0 %v520_v52 }
 0x281   :  { %v1252_v54 = vpop.f32.mrb[15].mxu1 }
 0x286   :  { %v1668_v55 = vpop.f32.mrb[16].mxu1 }
 0x287   :  { %v1263_v56 = vpop.f32.mrb[17].mxu1  ;;  %v647_v57 = vsel %vm142_vm2, %v1668_v55, -inf }
 0x288   :  { %648 = vmax.xlane.f32.xlu1 %v647_v57  ;;  %v644_v58 = vpop.f32.mrb[18].mxu1 }
 0x289   :  { %v1264_v59 = vpop.f32.mrb[19].mxu1 }
 0x28e   :  { %v751_v60 = vpop.f32.mrb[20].mxu1 }
 0x28f   :  { %v1275_v61 = vpop.f32.mrb[21].mxu1  ;;  %v757_v62 = vsel %vm142_vm2, %v751_v60, -inf }
 0x290   :  { %758 = vmax.xlane.f32.xlu0 %v757_v62  ;;  %v754_v63 = vpop.f32.mrb[22].mxu1 }
 0x291   :  { %v1276_v1 = vpop.f32.mrb[23].mxu1 }
 0x296   :  { %v861_v2 = vpop.f32.mrb[24].mxu1 }
 0x297   :  { %v1287_v3 = vpop.f32.mrb[25].mxu1  ;;  %v867_v4 = vsel %vm142_vm2, %v861_v2, -inf }
 0x298   :  { %868 = vmax.xlane.f32.xlu1 %v867_v4  ;;  %v864_v5 = vpop.f32.mrb[26].mxu1 }
 0x299   :  { %v1288_v6 = vpop.f32.mrb[27].mxu1 }
 0x29e   :  { %v1674_v7 = vpop.f32.mrb[28].mxu1 }
 0x29f   :  { %v1299_v8 = vpop.f32.mrb[29].mxu1  ;;  %v977_v13 = vsel %vm142_vm2, %v1674_v7, -inf }
 0x2a0   :  { %v974_v10 = vpop.f32.mrb[30].mxu1 }
 0x2a1   :  { %v1300_v11 = vpop.f32.mrb[31].mxu1 }
 0x2a6   :  { %312 = vrot.lane.b32.xlu0 %v1601_v9, %s1497_s12 }
 0x2a9   :  { %201 = vrot.lane.b32.xlu1 %v1601_v9, %s1485_s30 }
 0x2c5   :  { %978 = vmax.xlane.f32.xlu0 %v977_v13 }
 0x2f5   :  { %v191_v14 = vpop.xlane.xlu0 %190 }
 0x2f6   :  { %v192_v15 = vsub.f32 %v183_v35, %v191_v14 }
 0x2f8   :  { %v193_v16 = vmul.f32 1.442695, %v192_v15 }
 0x2fa   :  { %1357 = vpow2.f32 %v193_v16 }
 0x2fd   :  { %v302_v17 = vpop.xlane.xlu1 %301 }
 0x2fe   :  { %v303_v18 = vsub.f32 %v294_v40, %v302_v17 }
 0x300   :  { %v304_v19 = vmul.f32 1.442695, %v303_v18 }
 0x302   :  { %1359 = vpow2.f32 %v304_v19 }
 0x304   :  { %v1682_v20 = vpop.eup %1357 }
 0x305   :  { %v412_v21 = vpop.xlane.xlu0 %411  ;;  %v195_v22 = vsel %vm142_vm2, %v1682_v20, 0.0 }
 0x306   :  { %v413_v23 = vsub.f32 %v404_v45, %v412_v21  ;;  %196 = vadd.xlane.f32.xlu1 %v195_v22 }
 0x308   :  { %v414_v24 = vmul.f32 1.442695, %v413_v23 }
 0x30a   :  { %1361 = vpow2.f32 %v414_v24 }
 0x30c   :  { %v1686_v25 = vpop.eup %1359 }
 0x30d   :  { %v306_v26 = vsel %vm142_vm2, %v1686_v25, 0.0  ;;  %v522_v32 = vpop.xlane.xlu0 %521 }
 0x30e   :  { %307 = vadd.xlane.f32.xlu0 %v306_v26  ;;  %v523_v34 = vsub.f32 %v1664_v50, %v522_v32 }
 0x310   :  { %v524_v35 = vmul.f32 1.442695, %v523_v34 }
 0x312   :  { %1363 = vpow2.f32 %v524_v35 }
 0x314   :  { %v1690_v27 = vpop.eup %1361 }
 0x315   :  { %v416_v28 = vsel %vm142_vm2, %v1690_v27, 0.0  ;;  %v649_v29 = vpop.xlane.xlu1 %648 }
 0x316   :  { %417 = vadd.xlane.f32.xlu1 %v416_v28  ;;  %v650_v36 = vsub.f32 %v1668_v55, %v649_v29 }
 0x318   :  { %v651_v39 = vmul.f32 1.442695, %v650_v36 }
 0x31a   :  { %1365 = vpow2.f32 %v651_v39 }
 0x31c   :  { %v1364_v42 = vpop.eup %1363 }
 0x31d   :  { %v759_v37 = vpop.xlane.xlu0 %758  ;;  %v526_v43 = vsel %vm142_vm2, %v1364_v42, 0.0 }
 0x31e   :  { %v760_v38 = vsub.f32 %v751_v60, %v759_v37 }
 0x320   :  { %v761_v41 = vmul.f32 1.442695, %v760_v38 }
 0x321   :  { %v313_v50 = vpop.permute.xlu0 %312 }
 0x322   :  { %1367 = vpow2.f32 %v761_v41  ;;  %v318_v61 = vsel %vm206_vm3, %v313_v50, 0 }
 0x324   :  { %422 = vrot.lane.b32.xlu0 %v1601_v9, %s1498_s13  ;;  %v1703_v44 = vpop.eup %1365 }
 0x325   :  { %v869_v30 = vpop.xlane.xlu1 %868  ;;  %v653_v46 = vsel %vm142_vm2, %v1703_v44, 0.0 }
 0x326   :  { %v870_v40 = vsub.f32 %v861_v2, %v869_v30 }
 0x327   :  { %532 = vrot.lane.b32.xlu1 %v1601_v9, %s1499_s14 }
 0x328   :  { %v871_v9 = vmul.f32 1.442695, %v870_v40 }
 0x329   :  { %v202_v31 = vpop.permute.xlu1 %201 }
 0x32a   :  { %v208_v33 = vsel %vm206_vm3, %v202_v31, 0  ;;  %1369 = vpow2.f32 %v871_v9 }
 0x32b   :  { %1218 = vmatpush3.bf16.msra.mxu0 %v208_v33 }
 0x32c   :  { %1229 = vmatprep.subr.bf16.mxu0 %v1488_v0  ;;  %v1705_v45 = vpop.eup %1367 }
 0x32d   :  { %v763_v48 = vsel %vm142_vm2, %v1705_v45, 0.0 }
 0x334   :  { %v1709_v47 = vpop.eup %1369 }
 0x335   :  { %v873_v49 = vsel %vm142_vm2, %v1709_v47, 0.0 }
 0x343   :  { %527 = vadd.xlane.f32.xlu0 %v526_v43 }
 0x347   :  { %654 = vadd.xlane.f32.xlu0 %v653_v46 }
 0x34b   :  { %764 = vadd.xlane.f32.xlu1 %v763_v48  ;;  %874 = vadd.xlane.f32.xlu0 %v873_v49 }
 0x352   :  { %v979_v51 = vpop.xlane.xlu0 %978 }
 0x353   :  { %v980_v52 = vsub.f32 %v1674_v7, %v979_v51 }
 0x355   :  { %v981_v53 = vmul.f32 1.442695, %v980_v52 }
 0x357   :  { %1371 = vpow2.f32 %v981_v53 }
 0x35c   :  { %769 = vrot.lane.b32.xlu1 %v1609_v12, %s1497_s12 }
 0x360   :  { %879 = vrot.lane.b32.xlu1 %v1609_v12, %s1498_s13 }
 0x361   :  { %v1720_v54 = vpop.eup %1371 }
 0x362   :  { %v983_v55 = vsel %vm142_vm2, %v1720_v54, 0.0 }
 0x363   :  { %984 = vadd.xlane.f32.xlu0 %v983_v55 }
 0x364   :  { %989 = vrot.lane.b32.xlu1 %v1609_v12, %s1499_s14 }
 0x379   :  { %659 = vrot.lane.b32.xlu0 %v1609_v12, %s1485_s30  ;;  %s1500_s30 = smov 8  }
 0x393   :  { %v197_v56 = vpop.xlane.xlu1 %196 }
 0x394   :  { %1373 = vrcp.f32 %v197_v56 }
 0x39b   :  { %v308_v57 = vpop.xlane.xlu0 %307 }
 0x39c   :  { %1375 = vrcp.f32 %v308_v57 }
 0x39e   :  { %v1374_v58 = vpop.eup %1373 }
 0x39f   :  { %v199_v59 = vmul.f32 %v1374_v58, %v1682_v20  ;;  %v423_v1 = vpop.permute.xlu0 %422 }
 0x3a0   :  { %v428_v3 = vsel %vm206_vm3, %v423_v1, 0 }
 0x3a1   :  { %v200_v60 = vpack.c.bf16 %v199_v59, %v199_v59  ;;  %v1355_v59 = vld [vmem:[#allocation7] sm:$0xff]  }
 0x3a2   :  { %1308 = vmatpush3.bf16.msra.mxu1 %v1355_v59 }
 0x3a3   :  { %1220 = vmatmul.mubr.msk.bf16.vlgmr.msra.gmra.mrb[4].mxu0 %vm142_vm2, %v200_v60  ;;  %v418_v62 = vpop.xlane.xlu1 %417  ;;  %1309 = vmatprep.subr.bf16.mxu1 %v1488_v0 }
 0x3a4   :  { %1230 = vmatpush3.bf16.msra.mxu0 %v318_v61  ;;  %1377 = vrcp.f32 %v418_v62  ;;  %1231 = vmatprep.mubr.msk.bf16.mxu0 %vm1489_vm0, %v1488_v0 }
 0x3a5   :  { %1241 = vmatprep.subr.bf16.mxu0 %v1488_v0 }
 0x3a6   :  { %v1376_v12 = vpop.eup %1375 }
 0x3a7   :  { %v310_v63 = vmul.f32 %v1376_v12, %v1686_v25  ;;  %v533_v6 = vpop.permute.xlu1 %532 }
 0x3a8   :  { %v538_v8 = vsel %vm206_vm3, %v533_v6, 0 }
 0x3a9   :  { %v311_v2 = vpack.c.bf16 %v310_v63, %v310_v63  ;;  %v1356_v63 = vld [vmem:[#allocation7 + $0x8] sm:$0xff]  }
 0x3aa   :  { %1310 = vmatpush3.bf16.msra.mxu1 %v1356_v63 }
 0x3ab   :  { %1232 = vmatmul.mubr.msk.bf16.vlgmr.msra.gmra.mrb[8].mxu0 %vm142_vm2, %v311_v2 }
 0x3ac   :  { %1242 = vmatpush3.bf16.msra.mxu0 %v428_v3  ;;  %1243 = vmatprep.mubr.msk.bf16.mxu0 %vm1489_vm0, %v1488_v0 }
 0x3ad   :  { %1253 = vmatprep.subr.bf16.mxu0 %v1488_v0 }
 0x3ae   :  { %v1378_v4 = vpop.eup %1377 }
 0x3af   :  { %v420_v5 = vmul.f32 %v1378_v4, %v1690_v27 }
 0x3b1   :  { %v421_v7 = vpack.c.bf16 %v420_v5, %v420_v5 }
 0x3b3   :  { %1244 = vmatmul.mubr.msk.bf16.vlgmr.msra.gmra.mrb[12].mxu0 %vm142_vm2, %v421_v7 }
 0x3b4   :  { %1254 = vmatpush3.bf16.msra.mxu0 %v538_v8  ;;  %1255 = vmatprep.mubr.msk.bf16.mxu0 %vm1489_vm0, %v1488_v0 }
 0x3b5   :  { %1265 = vmatprep.subr.bf16.mxu0 %v1488_v0 }
 0x3d0   :  { %v528_v10 = vpop.xlane.xlu0 %527 }
 0x3d1   :  { %1379 = vrcp.f32 %v528_v10 }
 0x3d4   :  { %v655_v15 = vpop.xlane.xlu0 %654 }
 0x3d5   :  { %1381 = vrcp.f32 %v655_v15 }
 0x3d8   :  { %v765_v16 = vpop.xlane.xlu1 %764  ;;  %v875_v17 = vpop.xlane.xlu0 %874 }
 0x3d9   :  { %1383 = vrcp.f32 %v765_v16 }
 0x3da   :  { %1385 = vrcp.f32 %v875_v17 }
 0x3db   :  { %v1380_v11 = vpop.eup %1379 }
 0x3dc   :  { %v530_v13 = vmul.f32 %v1380_v11, %v1364_v42  ;;  %v770_v23 = vpop.permute.xlu1 %769 }
 0x3dd   :  { %v775_v26 = vsel %vm206_vm3, %v770_v23, 0 }
 0x3de   :  { %v531_v14 = vpack.c.bf16 %v530_v13, %v530_v13 }
 0x3df   :  { %v1382_v18 = vpop.eup %1381 }
 0x3e0   :  { %1256 = vmatmul.mubr.msk.bf16.vlgmr.msra.gmra.mrb[16].mxu0 %vm142_vm2, %v531_v14  ;;  %v657_v20 = vmul.f32 %v1382_v18, %v1703_v44  ;;  %v880_v28 = vpop.permute.xlu1 %879 }
 0x3e1   :  { %1267 = vmatprep.mubr.msk.bf16.mxu0 %vm1489_vm0, %v1488_v0  ;;  %v885_v31 = vsel %vm206_vm3, %v880_v28, 0  ;;  %v1161_v28 = vld [vmem:[%s1797_s4] ss:$0 sm:$0xff] }
 0x3e2   :  { %v658_v24 = vpack.c.bf16 %v657_v20, %v657_v20 }
 0x3e3   :  { %v1384_v25 = vpop.eup %1383 }
 0x3e4   :  { %v767_v27 = vmul.f32 %v1384_v25, %v1705_v45  ;;  %v1386_v30 = vpop.eup %1385  ;;  %v990_v33 = vpop.permute.xlu1 %989 }
 0x3e5   :  { %v877_v32 = vmul.f32 %v1386_v30, %v1709_v47  ;;  %v995_v36 = vsel %vm206_vm3, %v990_v33, 0 }
 0x3e6   :  { %v768_v29 = vpack.c.bf16 %v767_v27, %v767_v27 }
 0x3e7   :  { %v878_v34 = vpack.c.bf16 %v877_v32, %v877_v32 }
 0x3f0   :  { %v985_v19 = vpop.xlane.xlu0 %984 }
 0x3f1   :  { %1387 = vrcp.f32 %v985_v19 }
 0x3f4   :  { %v660_v21 = vpop.permute.xlu0 %659 }
 0x3f5   :  { %v665_v22 = vsel %vm206_vm3, %v660_v21, 0 }
 0x3f6   :  { %1266 = vmatpush3.bf16.msra.mxu0 %v665_v22 }
 0x3f7   :  { %1277 = vmatprep.subr.bf16.mxu0 %v1488_v0 }
 0x3f9   :  { %1268 = vmatmul.mubr.msk.bf16.vlgmr.msra.gmra.mrb[20].mxu0 %vm142_vm2, %v658_v24 }
 0x3fa   :  { %1278 = vmatpush3.bf16.msra.mxu0 %v775_v26  ;;  %1279 = vmatprep.mubr.msk.bf16.mxu0 %vm1489_vm0, %v1488_v0 }
 0x3fb   :  { %1289 = vmatprep.subr.bf16.mxu0 %v1488_v0  ;;  %v1388_v35 = vpop.eup %1387 }
 0x3fc   :  { %v987_v37 = vmul.f32 %v1388_v35, %v1720_v54 }
 0x3fe   :  { %v988_v38 = vpack.c.bf16 %v987_v37, %v987_v37 }
 0x401   :  { %1280 = vmatmul.mubr.msk.bf16.vlgmr.msra.gmra.mrb[24].mxu0 %vm142_vm2, %v768_v29 }
 0x402   :  { %1290 = vmatpush3.bf16.msra.mxu0 %v885_v31  ;;  %1291 = vmatprep.mubr.msk.bf16.mxu0 %vm1489_vm0, %v1488_v0 }
 0x403   :  { %1301 = vmatprep.subr.bf16.mxu0 %v1488_v0 }
 0x409   :  { %1292 = vmatmul.mubr.msk.bf16.vlgmr.msra.gmra.mrb[28].mxu0 %vm142_vm2, %v878_v34 }
 0x40a   :  { %1302 = vmatpush3.bf16.msra.mxu0 %v995_v36  ;;  %1303 = vmatprep.mubr.msk.bf16.mxu0 %vm1489_vm0, %v1488_v0 }
 0x411   :  { %1304 = vmatmul.mubr.msk.bf16.vlgmr.msra.gmra.mrb[32].mxu0 %vm142_vm2, %v988_v38 }
 0x476   :  { %v244_v39 = vpop.f32.mrb[4].mxu0 }
 0x477   :  { %v1221_v40 = vpop.f32.mrb[5].mxu0 }
 0x478   :  { %v247_v41 = vpop.f32.mrb[6].mxu0 }
 0x479   :  { %v1222_v9 = vpop.f32.mrb[7].mxu0 }
 0x47e   :  { %v354_v42 = vpop.f32.mrb[8].mxu0 }
 0x47f   :  { %v1233_v43 = vpop.f32.mrb[9].mxu0 }
 0x480   :  { %v357_v44 = vpop.f32.mrb[10].mxu0 }
 0x481   :  { %v1234_v45 = vpop.f32.mrb[11].mxu0 }
 0x486   :  { %v464_v46 = vpop.f32.mrb[12].mxu0 }
 0x487   :  { %v1245_v47 = vpop.f32.mrb[13].mxu0 }
 0x488   :  { %v467_v48 = vpop.f32.mrb[14].mxu0 }
 0x489   :  { %v1246_v49 = vpop.f32.mrb[15].mxu0 }
 0x4b3   :  { %v574_v50 = vpop.f32.mrb[16].mxu0 }
 0x4b4   :  { %v1257_v51 = vpop.f32.mrb[17].mxu0 }
 0x4b5   :  { %v577_v52 = vpop.f32.mrb[18].mxu0 }
 0x4b6   :  { %v1258_v53 = vpop.f32.mrb[19].mxu0 }
 0x4cc   :  { %v701_v54 = vpop.f32.mrb[20].mxu0 }
 0x4cd   :  { %v1269_v55 = vpop.f32.mrb[21].mxu0 }
 0x4ce   :  { %v704_v56 = vpop.f32.mrb[22].mxu0 }
 0x4cf   :  { %v1270_v57 = vpop.f32.mrb[23].mxu0 }
 0x4d4   :  { %v811_v58 = vpop.f32.mrb[24].mxu0 }
 0x4d5   :  { %v1337_v60 = vpack.i.bf16 %v811_v58, %v354_v42  ;;  %v1281_v61 = vpop.f32.mrb[25].mxu0 }
 0x4d6   :  { %v814_v62 = vpop.f32.mrb[26].mxu0 }
 0x4d7   :  { %1338 = vrot.lane.b32.xlu1 %v1337_v60, %s1500_s30  ;;  %v1282_v12 = vpop.f32.mrb[27].mxu0 }
 0x4dc   :  { %v921_v1 = vpop.f32.mrb[28].mxu0 }
 0x4dd   :  { %v1342_v2 = vpack.i.bf16 %v921_v1, %v464_v46  ;;  %v1293_v3 = vpop.f32.mrb[29].mxu0 }
 0x4de   :  { %v924_v4 = vpop.f32.mrb[30].mxu0 }
 0x4df   :  { %1343 = vrot.lane.b32.xlu1 %v1342_v2, %s1501_s15  ;;  %v1294_v5 = vpop.f32.mrb[31].mxu0 }
 0x4e4   :  { %v1031_v6 = vpop.f32.mrb[32].mxu0 }
 0x4e5   :  { %v1347_v7 = vpack.i.bf16 %v1031_v6, %v574_v50  ;;  %v1305_v8 = vpop.f32.mrb[33].mxu0 }
 0x4e6   :  { %v1034_v10 = vpop.f32.mrb[34].mxu0 }
 0x4e7   :  { %1348 = vrot.lane.b32.xlu0 %v1347_v7, %s1502_s16  ;;  %v1306_v11 = vpop.f32.mrb[35].mxu0 }
 0x549   :  { %v1339_v13 = vpop.permute.xlu1 %1338 }
 0x54a   :  { %v1341_v15 = vunpack.i.h.bf16 %v1339_v13  ;;  %v1340_v0 = vunpack.i.l.bf16 %v1339_v13 }
 0x54c   :  { %v1049_v19 = vsel %vm142_vm2, %v701_v54, %v1341_v15  ;;  %v592_v20 = vsel %vm142_vm2, %v244_v39, %v1340_v0 }
 0x551   :  { %v1344_v14 = vpop.permute.xlu1 %1343 }
 0x552   :  { %v1346_v16 = vunpack.i.h.bf16 %v1344_v14  ;;  %v1345_v17 = vunpack.i.l.bf16 %v1344_v14 }
 0x554   :  { %v1050_v23 = vsel %vm593_vm4, %v1049_v19, %v1346_v16  ;;  %v594_v24 = vsel %vm593_vm4, %v592_v20, %v1345_v17 }
 0x559   :  { %v1349_v18 = vpop.permute.xlu0 %1348 }
 0x55a   :  { %v1351_v21 = vunpack.i.h.bf16 %v1349_v18  ;;  %v1350_v22 = vunpack.i.l.bf16 %v1349_v18 }
 0x55c   :  { %v1051_v25 = vsel %vm595_vm5, %v1050_v23, %v1351_v21  ;;  %v596_v26 = vsel %vm595_vm5, %v594_v24, %v1350_v22 }
 0x55d   :  { %v1052_v27 = vpack.c.bf16 %v1051_v25, %v596_v26 }
 0x55f   :  { %1312 = vmatmul.mubr.msk.bf16.vlgmr.msra.gmra.mrb[32].mxu1 %vm93_vm1, %v1052_v27 }
 0x632   :  { %v1113_v29 = vpop.f32.mrb[32].mxu1 }
 0x633   :  { %v1114_v30 = vadd.f32 %v1161_v28, %v1113_v29  ;;  %v1313_v31 = vpop.f32.mrb[33].mxu1 }
 0x634   :  { %v1116_v32 = vpop.f32.mrb[34].mxu1 }
 0x635   :  { %1120 = vst.msk [vmem:[#allocation8] sm:$0xff] %vm93_vm1, %v1114_v30  ;;  %v1117_v33 = vadd.f32 %v1161_v28, %v1116_v32  ;;  %v1314_v34 = vpop.f32.mrb[35].mxu1 }
 0x637   :  { %1121 = vst.msk [vmem:[#allocation8 + $0x8] sm:$0xff] %vm93_vm1, %v1117_v33 }
 0x638   :  { %1466 = shalt.err (!%p1463_p0)
}
 0x639   :  { %s1467_s23 = scalar_lea.hbm %s1798_s5, 256 }
 0x63a   :  { %p1468_p1 = scmp.ne.s32.totalorder %s1798_s5, %s1467_s23  ;;  %p1471_p2 = scmp.lt.u32.totalorder %s1467_s23, %s1798_s5 }
 0x63c   :  { %p1473_p3 = pnand %p1471_p2, %p1468_p1 }
 0x63e   :  { %1476 = shalt.err (!%p1473_p3)
}
 0x63f   :  { %s1504_s28 = smov 128  }
 0x640   :  { %1133 = dma.vmem_to_hbm [thread:$0]  %s1128_s19, 256, %s1798_s5, [#allocation4], %s1504_s28, %s1504_s28, %s1500_s30  }
 0x641   :  { %1481 = dma.done.wait [#allocation4], 256  }
 0x642   :  { %1482 = vsyncadd [#allocation4], 4294967040 }
 0x643   :  { %1137 = vsyncpa [#allocation3], 1 }
 0x644   :  { %1138 = vsyncpa [#allocation6], 1 }
 0x645   :  { %1139 = vsyncpa [#allocation4], 1 }

</bundles_post_ra>
